<compile_context>
chip_gen: v5e
topology: v5e:2x2
jax: 0.10.0
libtpu: 0.0.40
codegen_flags: <defaults>
</compile_context>

<pallas_src>
import functools

import jax
import jax.numpy as jnp
from jax.experimental import pallas as pl
from jax.experimental.pallas import tpu as pltpu


def _cab_kernel(x_ref, w1_ref, b1_ref, w2_ref, b2_ref, o_ref):
    """x_ref/o_ref: (bt, C, T) tile.  Weights/biases: tiny resident VMEM blocks."""
    w1 = w1_ref[...]            # (Cr, C)
    b1 = b1_ref[...]            # (Cr, 1)
    w2 = w2_ref[...]            # (C, Cr)
    b2 = b2_ref[...]            # (C, 1)
    for i in range(x_ref.shape[0]):                  # static unroll, bt <= 8
        x = x_ref[i]                                 # (C, T), native dtype
        # conv1 (1x1): channel mix on the MXU (f32 accumulation), bias, ReLU.
        h = jnp.dot(w1, x, preferred_element_type=jnp.float32)        # (Cr, T)
        h = jnp.maximum(h + b1, 0.0)
        # conv2 (1x1): back to C channels, bias.
        z = jnp.dot(w2, h.astype(w2.dtype), preferred_element_type=jnp.float32)
        z = z + b2                                                     # (C, T)
        # sigmoid(z) == 0.5*tanh(0.5*z) + 0.5 : single EUP tanh instead of
        # exp + full-precision divide on the VALU (mathematically exact).
        gate = 0.5 * jnp.tanh(0.5 * z) + 0.5
        # TODO(synk): a bf16 elementwise tail would shave VPU work on v6e/v7x;
        # kept in f32 here for accuracy and v5e compatibility.
        o_ref[i] = (x * gate).astype(o_ref.dtype)


def _device_defaults():
    """Per-TPU-generation (target_tile_bytes, vmem_limit_bytes)."""
    try:
        kind = jax.devices()[0].device_kind.lower()
    except Exception:
        kind = ""
    if "v7" in kind or "tpu7" in kind:
        # v7x: 64 MiB physical VMEM (32 MiB scoped default), ~3.2 TB/s HBM.
        return 2 << 20, 48 << 20
    if "v6" in kind:
        # v6e: 128 MiB physical VMEM, ~1.4 TB/s HBM -> bigger tiles, raised limit.
        return 4 << 20, 64 << 20
    if "v5" in kind and ("lite" in kind or "v5e" in kind):
        # v5e: slow HBM (~0.8 TB/s); 1 MiB tiles fit the 16 MiB scoped default.
        return 1 << 20, 16 << 20
    # Unknown / other (v4, v5p, interpret): conservative middle ground.
    return 2 << 20, 48 << 20


def _choose_tiling(batch, c, hw, itemsize, target_tile_bytes, min_steps=8):
    """Pick (bt, tile_hw, grid): bt | batch, lane-dense spatial tiles, no padding."""
    # Max lanes per (C, tile) block at the byte budget, multiple of 128.
    max_lanes = max(128, (target_tile_bytes // (c * itemsize)) // 128 * 128)

    if hw > max_lanes and hw % 128 == 0:
        # Streaming regime: 128-multiple divisor tiles => no pad, no ragged tail.
        cands = [t for t in range(128, max_lanes + 1, 128) if hw % t == 0]
        tile_hw = max(cands)
        # Megacore balance: prefer a few more grid steps over one giant tile.
        while batch * (hw // tile_hw) < min_steps:
            smaller = [t for t in cands if t < tile_hw]
            if not smaller:
                break
            tile_hw = max(smaller)
        return 1, tile_hw, (batch, hw // tile_hw)

    if hw > max_lanes:
        # hw not a multiple of 128 and too large for one block: rely on Pallas
        # masking the ragged last block (reads past hw are unspecified, writes
        # are dropped; the 1x1 convs never mix spatial columns, so in-bounds
        # outputs are unaffected).
        return 1, max_lanes, (batch, pl.cdiv(hw, max_lanes))

    # Small-spatial regime: one full-extent spatial block; pack several batch
    # images per grid step to amortize the ~0.35us per-step overhead while
    # keeping enough grid steps for both TensorCores (v7x megacore).
    bt_cap = max(1, target_tile_bytes // max(1, c * hw * itemsize))
    bt_cap = min(bt_cap, 8, max(1, batch // min_steps))
    bt = 1
    for d in range(1, batch + 1):
        if batch % d == 0 and d <= bt_cap:
            bt = d
    return bt, hw, (batch // bt, 1)


@functools.partial(
    jax.jit,
    static_argnames=("target_tile_bytes", "vmem_limit_bytes", "donate_x"))
def cab_block(x_nchw, w1, b1, w2, b2, *, target_tile_bytes=None,
              vmem_limit_bytes=None, donate_x=False):
    """CABlock forward.

    x_nchw: (B, C, H, W).  w1: (C//r, C), b1: (C//r,), w2: (C, C//r), b2: (C,)
    (conv weights in PyTorch (out_channels, in_channels) orientation).
    Set donate_x=True (and donate x at the jit boundary) to alias the output
    onto x's HBM buffer.
    """
    B, C, H, W = x_nchw.shape
    Cr = w1.shape[0]
    HW = H * W
    itemsize = jnp.dtype(x_nchw.dtype).itemsize

    default_tile, default_vmem = _device_defaults()
    if target_tile_bytes is None:
        target_tile_bytes = default_tile
    if vmem_limit_bytes is None:
        vmem_limit_bytes = default_vmem

    bt, tile_hw, grid = _choose_tiling(B, C, HW, itemsize, target_tile_bytes)

    # NCHW -> (B, C, H*W): a pure reshape; no transpose, no padding, no copies.
    x3 = x_nchw.reshape(B, C, HW)

    out3 = pl.pallas_call(
        _cab_kernel,
        out_shape=jax.ShapeDtypeStruct((B, C, HW), x_nchw.dtype),
        grid_spec=pltpu.PrefetchScalarGridSpec(
            num_scalar_prefetch=0,
            grid=grid,
            in_specs=[
                pl.BlockSpec((bt, C, tile_hw), lambda b, j: (b, 0, j)),  # x tile
                pl.BlockSpec((Cr, C), lambda b, j: (0, 0)),              # w1 (resident)
                pl.BlockSpec((Cr, 1), lambda b, j: (0, 0)),              # b1
                pl.BlockSpec((C, Cr), lambda b, j: (0, 0)),              # w2
                pl.BlockSpec((C, 1), lambda b, j: (0, 0)),               # b2
            ],
            out_specs=pl.BlockSpec((bt, C, tile_hw), lambda b, j: (b, 0, j)),
        ),
        compiler_params=pltpu.CompilerParams(
            dimension_semantics=("parallel", "parallel"),
            vmem_limit_bytes=vmem_limit_bytes),
        input_output_aliases={0: 0} if donate_x else {},
    )(x3, w1, b1.reshape(Cr, 1), w2, b2.reshape(C, 1))

    return out3.reshape(B, C, H, W)


def _reference(x_nchw, w1, b1, w2, b2):
    # Pure-JAX reference of the module's forward (exact sigmoid), NCHW-native.
    h = jnp.maximum(
        jnp.einsum("rc,bchw->brhw", w1, x_nchw) + b1[None, :, None, None], 0.0)
    y = jax.nn.sigmoid(
        jnp.einsum("cr,brhw->bchw", w2, h) + b2[None, :, None, None])
    return x_nchw * y


if __name__ == "__main__":
    # Module config: in_channels must be divisible by ratio (default 16).
    B, C, H, W = 2, 32, 8, 8
    ratio = 16
    Cr = C // ratio   # = 2

    key = jax.random.PRNGKey(0)
    kx, kw1, kb1, kw2, kb2 = jax.random.split(key, 5)

    x = jax.random.normal(kx, (B, C, H, W), dtype=jnp.float32)
    # Params in PyTorch conv orientation (out_ch, in_ch); weights ~ N(0, sqrt(2/out_ch)).
    w1 = jax.random.normal(kw1, (Cr, C), dtype=jnp.float32) * jnp.sqrt(2.0 / Cr)
    b1 = jax.random.normal(kb1, (Cr,), dtype=jnp.float32) * 0.01
    w2 = jax.random.normal(kw2, (C, Cr), dtype=jnp.float32) * jnp.sqrt(2.0 / C)
    b2 = jax.random.normal(kb2, (C,), dtype=jnp.float32) * 0.01

    ref = _reference(x, w1, b1, w2, b2)

    # 1) Small full-block path (f32).  Tolerance is looser than 1e-5 only
    #    because sigmoid goes through the EUP tanh identity in-kernel.
    out = jax.block_until_ready(cab_block(x, w1, b1, w2, b2))
    assert out.shape == x.shape
    assert jnp.allclose(out, ref, atol=1e-2, rtol=1e-2), "f32 mismatch vs reference"

    # 2) Tiled streaming path: force small spatial tiles so the divisor-tile /
    #    megacore-balancing branch runs (no padding in any branch).
    x2 = jax.random.normal(kx, (2, C, 64, 64), dtype=jnp.float32)
    ref2 = _reference(x2, w1, b1, w2, b2)
    out2 = jax.block_until_ready(
        cab_block(x2, w1, b1, w2, b2, target_tile_bytes=1 << 18))
    assert jnp.allclose(out2, ref2, atol=1e-2, rtol=1e-2), "tiled mismatch vs reference"

    # 3) bf16 I/O path (halves HBM traffic on this bandwidth-bound op).
    outb = jax.block_until_ready(
        cab_block(x.astype(jnp.bfloat16), w1.astype(jnp.bfloat16),
                  b1.astype(jnp.bfloat16), w2.astype(jnp.bfloat16),
                  b2.astype(jnp.bfloat16)))
    assert outb.dtype == jnp.bfloat16 and outb.shape == x.shape
    assert jnp.allclose(outb.astype(jnp.float32), ref, atol=0.1, rtol=0.1), \
        "bf16 mismatch vs reference"

    print("KERNEL_OK")
</pallas_src>

<mosaic_0001>
module attributes {stable_mosaic.version = 11 : i64} {
  func.func @_cab_kernel(%arg0: i32, %arg1: i32, %arg2: memref<1x32x64xf32, #tpu.memory_space<vmem>>, %arg3: memref<2x32xf32, #tpu.memory_space<vmem>>, %arg4: memref<2x1xf32, #tpu.memory_space<vmem>>, %arg5: memref<32x2xf32, #tpu.memory_space<vmem>>, %arg6: memref<32x1xf32, #tpu.memory_space<vmem>>, %arg7: memref<1x32x64xf32, #tpu.memory_space<vmem>>) attributes {dimension_semantics = [#tpu.dimension_semantics<parallel>, #tpu.dimension_semantics<parallel>], iteration_bounds = array<i64: 2, 1>, scalar_prefetch = 0 : i64, scratch_operands = 0 : i64, tpu.core_type = #tpu.core_type<tc>, window_params = [{transform_indices = @transform_0, window_bounds = array<i64: 1, 32, 64>}, {pipeline_mode = #tpu.pipeline_mode<synchronous>, transform_indices = @transform_1, window_bounds = array<i64: 2, 32>}, {pipeline_mode = #tpu.pipeline_mode<synchronous>, transform_indices = @transform_2, window_bounds = array<i64: 2, 1>}, {pipeline_mode = #tpu.pipeline_mode<synchronous>, transform_indices = @transform_3, window_bounds = array<i64: 32, 2>}, {pipeline_mode = #tpu.pipeline_mode<synchronous>, transform_indices = @transform_4, window_bounds = array<i64: 32, 1>}, {transform_indices = @transform_5, window_bounds = array<i64: 1, 32, 64>}]} {
    %c0 = arith.constant 0 : index
    %c0_0 = arith.constant 0 : index
    %0 = vector.load %arg3[%c0, %c0_0] : memref<2x32xf32, #tpu.memory_space<vmem>>, vector<2x32xf32>
    %c0_1 = arith.constant 0 : index
    %c0_2 = arith.constant 0 : index
    %1 = vector.load %arg4[%c0_1, %c0_2] : memref<2x1xf32, #tpu.memory_space<vmem>>, vector<2x1xf32>
    %c0_3 = arith.constant 0 : index
    %c0_4 = arith.constant 0 : index
    %2 = vector.load %arg5[%c0_3, %c0_4] : memref<32x2xf32, #tpu.memory_space<vmem>>, vector<32x2xf32>
    %c0_5 = arith.constant 0 : index
    %c0_6 = arith.constant 0 : index
    %3 = vector.load %arg6[%c0_5, %c0_6] : memref<32x1xf32, #tpu.memory_space<vmem>>, vector<32x1xf32>
    %c0_7 = arith.constant 0 : index
    %c0_8 = arith.constant 0 : index
    %c0_9 = arith.constant 0 : index
    %4 = vector.load %arg2[%c0_7, %c0_8, %c0_9] : memref<1x32x64xf32, #tpu.memory_space<vmem>>, vector<1x32x64xf32>
    %5 = vector.shape_cast %4 : vector<1x32x64xf32> to vector<32x64xf32>
    %cst = arith.constant dense<0.000000e+00> : vector<2x64xf32>
    %6 = tpu.matmul %0, %5, %cst {dimension_numbers = #tpu.dot_dimension_numbers<[1], [0], [0], [1], [0, 0, 1, 1], [], []>} : vector<2x32xf32>, vector<32x64xf32>, vector<2x64xf32> -> vector<2x64xf32>
    %7 = vector.broadcast %1 : vector<2x1xf32> to vector<2x64xf32>
    %8 = arith.addf %6, %7 : vector<2x64xf32>
    %cst_10 = arith.constant 0.000000e+00 : f32
    %9 = vector.broadcast %cst_10 : f32 to vector<2x64xf32>
    %10 = arith.maximumf %8, %9 : vector<2x64xf32>
    %cst_11 = arith.constant dense<0.000000e+00> : vector<32x64xf32>
    %11 = tpu.matmul %2, %10, %cst_11 {dimension_numbers = #tpu.dot_dimension_numbers<[1], [0], [0], [1], [0, 0, 1, 1], [], []>} : vector<32x2xf32>, vector<2x64xf32>, vector<32x64xf32> -> vector<32x64xf32>
    %12 = vector.broadcast %3 : vector<32x1xf32> to vector<32x64xf32>
    %13 = arith.addf %11, %12 : vector<32x64xf32>
    %cst_12 = arith.constant 5.000000e-01 : f32
    %14 = vector.broadcast %cst_12 : f32 to vector<32x64xf32>
    %15 = arith.mulf %14, %13 : vector<32x64xf32>
    %16 = math.tanh %15 : vector<32x64xf32>
    %cst_13 = arith.constant 5.000000e-01 : f32
    %17 = vector.broadcast %cst_13 : f32 to vector<32x64xf32>
    %18 = arith.mulf %17, %16 : vector<32x64xf32>
    %cst_14 = arith.constant 5.000000e-01 : f32
    %19 = vector.broadcast %cst_14 : f32 to vector<32x64xf32>
    %20 = arith.addf %18, %19 : vector<32x64xf32>
    %21 = arith.mulf %5, %20 : vector<32x64xf32>
    %c0_15 = arith.constant 0 : index
    %c0_16 = arith.constant 0 : index
    %c0_17 = arith.constant 0 : index
    %22 = vector.load %arg7[%c0_15, %c0_16, %c0_17] : memref<1x32x64xf32, #tpu.memory_space<vmem>>, vector<1x32x64xf32>
    %23 = vector.shape_cast %22 : vector<1x32x64xf32> to vector<32x64xf32>
    %24 = vector.shape_cast %21 : vector<32x64xf32> to vector<1x32x64xf32>
    tpu.vector_store %arg7[%c0_15, %c0_16, %c0_17], %24 {strides = array<i32>} : memref<1x32x64xf32, #tpu.memory_space<vmem>>, vector<1x32x64xf32>,
    return
  }
  func.func @transform_0(%arg0: i32, %arg1: i32) -> (i32, i32, i32) {
    %c0_i32 = arith.constant 0 : i32
    %c0_i32_0 = arith.constant 0 : i32
    return %arg0, %c0_i32, %arg1 : i32, i32, i32
  }
  func.func @transform_1(%arg0: i32, %arg1: i32) -> (i32, i32) {
    %c0_i32 = arith.constant 0 : i32
    %c0_i32_0 = arith.constant 0 : i32
    %c0_i32_1 = arith.constant 0 : i32
    return %c0_i32, %c0_i32_0 : i32, i32
  }
  func.func @transform_2(%arg0: i32, %arg1: i32) -> (i32, i32) {
    %c0_i32 = arith.constant 0 : i32
    %c0_i32_0 = arith.constant 0 : i32
    %c0_i32_1 = arith.constant 0 : i32
    return %c0_i32, %c0_i32_0 : i32, i32
  }
  func.func @transform_3(%arg0: i32, %arg1: i32) -> (i32, i32) {
    %c0_i32 = arith.constant 0 : i32
    %c0_i32_0 = arith.constant 0 : i32
    %c0_i32_1 = arith.constant 0 : i32
    return %c0_i32, %c0_i32_0 : i32, i32
  }
  func.func @transform_4(%arg0: i32, %arg1: i32) -> (i32, i32) {
    %c0_i32 = arith.constant 0 : i32
    %c0_i32_0 = arith.constant 0 : i32
    %c0_i32_1 = arith.constant 0 : i32
    return %c0_i32, %c0_i32_0 : i32, i32
  }
  func.func @transform_5(%arg0: i32, %arg1: i32) -> (i32, i32, i32) {
    %c0_i32 = arith.constant 0 : i32
    %c0_i32_0 = arith.constant 0 : i32
    return %arg0, %c0_i32, %arg1 : i32, i32, i32
  }
}

</mosaic_0001>

<bundles_post_ra>
// kernel: cab_block.1
= control target key start
LH: loop header
LB: loop body
LE: loop exit
PB: predicated region body
PF: predicated region fallthrough
CT: control target
= control target key end

     0   :  { %s586_s18 = smov 0   ;;  %s588_s19 = smov 0   ;;  %s672_s0 = inlined_call_operand.vmem [shape: f32[2,32,64], index: 0, kind: input, shape index: {}]   ;;  %s673_s1 = inlined_call_operand.vmem [shape: f32[2,32], index: 1, kind: input, shape index: {}]   ;;  %s674_s2 = inlined_call_operand.vmem [shape: f32[2,1], index: 2, kind: input, shape index: {}]   ;;  %s675_s3 = inlined_call_operand.vmem [shape: f32[32,2], index: 3, kind: input, shape index: {}]   ;;  %s676_s4 = inlined_call_operand.vmem [shape: f32[32,1], index: 4, kind: input, shape index: {}]   ;;  %s677_s5 = inlined_call_operand.vmem [shape: f32[2,32,64], index: 5, kind: output, shape index: {}]  }
   0x1   :  { %s590_s20 = smov 0  }
   0x2 LB: > { %s27_s21 = sadd.s32 1, %s549_s19  ;;  %p478_p0 = scmp.ge.s32.totalorder %s553_s20, 1  ;;  %s553_s20 = sphi %s590_s20, %s15_s20   ;;  %s549_s19 = sphi %s588_s19, %s679_s19   ;;  %s545_s18 = sphi %s586_s18, %s678_s18  }
   0x3   : > { %p29_p1 = scmp.ge.s32.totalorder %s27_s21, 2  ;;  %p206_p2 = scmp.lt.s32.totalorder %s553_s20, 3 }
   0x5   : > { %s681_s21 = smov (%p29_p1, %s27_s21), 0  ;;  %p207_p3 = pnand %p478_p0, %p206_p2 }
   0x6   : > { %p240_p4 = scmp.lt.s32.totalorder (!%p207_p3), %s545_s18, 1 }
   0x7   : > { %210 = sbr.rel (%p207_p3) target bundleno = 313 (0x139), region = 40 }
   0xc   : > { %v555_v0 = vmov 0   ;;  %v257_v1 = vld [vmem:[%s674_s2] sm:$0x3]  ;;  %s683_s18 = smov (!%p240_p4, %s545_s18), 1  ;;  %vm275_vm0 = vcmask 261120   ;;  %v263_v8 = vld [vmem:[%s676_s4 + $0x8] sm:$0xff] }
   0xd   : > { %520 = vset.pattern.permute.xlu0 %v555_v0  ;;  %521 = vset.pattern.permute.xlu1 %v555_v0  ;;  %s491_s24 = sshll.u32 %s683_s18, 5  ;;  %v262_v4 = vld [vmem:[%s676_s4] sm:$0xff]  ;;  %v265_v9 = vld [vmem:[%s676_s4 + $0x18] sm:$0xff]  ;;  %v264_v10 = vld [vmem:[%s676_s4 + $0x10] sm:$0xff]  ;;  %vm333_vm1 = vcmask 1041408   ;;  %vm320_vm2 = vcmask 15360  }
   0xe   : > { %272 = vperm.xlu0 %520, %v257_v1   ;;  %522 = vset.pattern.permute.xlu2 %v555_v0  ;;  %s247_s27 = scalar_lea.vmem %s672_s0, %s491_s24  ;;  %v256_v7 = vld [vmem:[%s673_s1] sm:$0x3]  ;;  %v259_v16 = vld [vmem:[%s675_s3 + $0x8] sm:$0xff]  ;;  %v261_v17 = vld [vmem:[%s675_s3 + $0x18] sm:$0xff]  ;;  %s255_s28 = scalar_lea.vmem %s677_s5, %s491_s24  ;;  %vm386_vm3 = vcmask 523264  }
   0xf   : > { %v615_v2 = vld [vmem:[%s247_s27 + $0x18] sm:$0xff]  ;;  %v617_v3 = vld [vmem:[%s247_s27 + $0x10] sm:$0xff]  ;;  %v623_v5 = vld [vmem:[%s247_s27 + $0x8] sm:$0xff]  ;;  %307 = vperm.xlu1 %521, %v263_v8   ;;  %317 = vperm.xlu2 %522, %v265_v9  }
  0x10   : > { %291 = vmatpush.msra.mxu0 %v615_v2  ;;  %v266_v6 = vld [vmem:[%s247_s27] sm:$0xff]  ;;  %v260_v18 = vld [vmem:[%s675_s3 + $0x10] sm:$0xff] }
  0x11   : > { %v258_v15 = vld [vmem:[%s675_s3] sm:$0xff] }
  0x12   : > { %292 = vmatpush.msra.mxu0 %v617_v3 }
  0x14   : > { %293 = vmatpush.msra.mxu0 %v623_v5 }
  0x16   : > { %302 = vperm.xlu0 %520, %v262_v4   ;;  %294 = vmatpush.msra.mxu0 %v266_v6 }
  0x17   : > { %483 = vmatmul.msk.f32.vlgmr.msra.gmra.mxu0 %vm275_vm0, %v256_v7  ;;  %312 = vperm.xlu1 %521, %v264_v10  }
  0x69   : > { %v318_v24 = vpop.permute.xlu2 %317 }
  0x80   : > { %v273_v11 = vpop.permute.xlu0 %272 }
  0x81   : > { %v308_v23 = vpop.permute.xlu1 %307 }
  0x88   : > { %v303_v19 = vpop.permute.xlu0 %302 }
  0x89   : > { %v313_v34 = vpop.permute.xlu1 %312 }
  0x94   : > { %v296_v12 = vpop.f32.mrf.mxu0 }
  0x95   : > { %v297_v13 = vadd.f32 %v296_v12, %v273_v11 }
  0x97   : > { %v299_v14 = vmax.f32 %v297_v13, 0.0 }
  0x99   : > { %484 = vmatpush.msk.msra.mxu1 %vm333_vm1, %v299_v14  ;;  %493 = vmatpush.msk.msra.mxu2 %vm333_vm1, %v299_v14 }
  0x9a   : > { %494 = vmatpush.msk.msra.mxu3 %vm333_vm1, %v299_v14  ;;  %485 = vmatmul.msk.f32.vlgmr.msra.gmra.mxu1 %vm320_vm2, %v258_v15 }
  0x9b   : > { %486 = vmatmul.msk.f32.vlgmr.msra.gmra.mxu2 %vm320_vm2, %v259_v16  ;;  %488 = vmatmul.msk.f32.vlgmr.msra.gmra.mxu3 %vm320_vm2, %v261_v17 }
  0xa3   : > { %487 = vmatmul.msk.f32.gmra.mxu2 %vm320_vm2, %v260_v18 }
 0x117   : > { %v354_v20 = vpop.f32.mrf.mxu1 }
 0x118   : > { %v355_v21 = vadd.f32 %v354_v20, %v303_v19 }
 0x11a   : > { %v366_v22 = vmul.f32 0.5, %v355_v21 }
 0x11c   : > { %523 = vtanh.f32 %v366_v22 }
 0x11e   : > { %v357_v25 = vpop.f32.mrf.mxu2  ;;  %v363_v26 = vpop.f32.mrf.mxu3 }
 0x11f   : > { %v358_v27 = vadd.f32 %v357_v25, %v308_v23  ;;  %v364_v28 = vadd.f32 %v363_v26, %v318_v24 }
 0x121   : > { %v367_v29 = vmul.f32 0.5, %v358_v27  ;;  %v369_v30 = vmul.f32 0.5, %v364_v28 }
 0x122   : > { %v524_v31 = vpop.eup %523 }
 0x123   : > { %v374_v32 = vmul.f32 0.5, %v524_v31  ;;  %525 = vtanh.f32 %v367_v29 }
 0x124   : > { %527 = vtanh.f32 %v369_v30 }
 0x125   : > { %v378_v33 = vadd.f32 0.5, %v374_v32 }
 0x126   : > { %v360_v35 = vpop.f32.mrf.mxu2 }
 0x127   : > { %v382_v36 = vmul.f32 %v378_v33, %v266_v6  ;;  %v361_v37 = vadd.f32 %v360_v35, %v313_v34 }
 0x129   : > { %v526_v38 = vpop.eup %525  ;;  %387 = vst.msk [vmem:[%s255_s28] sm:$0xff] %vm386_vm3, %v382_v36  ;;  %v368_v39 = vmul.f32 0.5, %v361_v37 }
 0x12a   : > { %v528_v40 = vpop.eup %527  ;;  %v375_v41 = vmul.f32 0.5, %v526_v38 }
 0x12b   : > { %529 = vtanh.f32 %v368_v39  ;;  %v377_v42 = vmul.f32 0.5, %v528_v40 }
 0x12c   : > { %v379_v43 = vadd.f32 0.5, %v375_v41 }
 0x12d   : > { %v381_v44 = vadd.f32 0.5, %v377_v42 }
 0x12e   : > { %v383_v45 = vmul.f32 %v379_v43, %v623_v5 }
 0x12f   : > { %v385_v46 = vmul.f32 %v381_v44, %v615_v2 }
 0x130   : > { %388 = vst.msk [vmem:[%s255_s28 + $0x8] sm:$0xff] %vm386_vm3, %v383_v45 }
 0x131   : > { %v530_v47 = vpop.eup %529  ;;  %390 = vst.msk [vmem:[%s255_s28 + $0x18] sm:$0xff] %vm386_vm3, %v385_v46 }
 0x132   : > { %v376_v48 = vmul.f32 0.5, %v530_v47 }
 0x134   : > { %v380_v49 = vadd.f32 0.5, %v376_v48 }
 0x136   : > { %v384_v50 = vmul.f32 %v380_v49, %v617_v3 }
 0x138   : > { %389 = vst.msk [vmem:[%s255_s28 + $0x10] sm:$0xff] %vm386_vm3, %v384_v50 }
 0x139 PF: > { %s15_s20 = sadd.s32 1, %s553_s20   ;;  %s678_s18 = smov %s549_s19 }
 0x13a   : > { %p12_p5 = scmp.ge.s32.totalorder %s15_s20, 4   ;;  %s679_s19 = smov %s681_s21 }
 0x13c   :  { %14 = sbr.rel (!%p12_p5) target bundleno = 2 (0x2), region = 70 }

</bundles_post_ra>
